<compile_context>
chip_gen: v5e
topology: v5e:2x2
jax: 0.10.0
libtpu: 0.0.40
codegen_flags: <defaults>
</compile_context>

<pallas_src>
import functools

import jax
import jax.numpy as jnp
from jax.experimental import pallas as pl
from jax.experimental.pallas import tpu as pltpu


def _round_up(n, m):
    return ((n + m - 1) // m) * m


def _pe_dropout_kernel(x_ref, pe_ref, *rest, dropout_p, batch):
    """out = dropout(x + pe) for one (TILE_S, B*E) tile, fully in VMEM.

    x_ref:  (TILE_S, B*E)  activations (lane-dense 2D view)
    pe_ref: (TILE_S, E)    positional-encoding rows for this sequence tile
    rest:   (bits_ref, o_ref) when dropout_p > 0 else (o_ref,)
    """
    if dropout_p > 0.0:
        bits_ref, o_ref = rest
    else:
        (o_ref,) = rest

    x = x_ref[...].astype(jnp.float32)            # (TILE_S, B*E)
    pe = pe_ref[...].astype(jnp.float32)          # (TILE_S, E)
    # Broadcast pe across the batch-major lane groups: [pe | pe | ... ] (B copies).
    pe_b = pe if batch == 1 else jnp.concatenate([pe] * batch, axis=-1)
    y = x + pe_b

    if dropout_p > 0.0:
        # Inverted dropout via a direct uint32 threshold compare (no shift /
        # int->float convert / fp mul): keep with prob (1 - p), scale by 1/(1-p).
        threshold = jnp.uint32(min(int(round(dropout_p * 2.0**32)), 2**32 - 1))
        keep = bits_ref[...] >= threshold
        scale = jnp.float32(1.0 / (1.0 - dropout_p))
        y = jnp.where(keep, y * scale, jnp.zeros_like(y))

    o_ref[...] = y.astype(o_ref.dtype)


def make_positional_encoding(pad_size, embed, dtype=jnp.float32):
    """Same values as the PyTorch module's `pe` buffer, stored as (pad_size, embed)."""
    position = jnp.arange(0, pad_size, dtype=jnp.float32)[:, None]          # (P, 1)
    div_term = jnp.exp(jnp.arange(0, embed, 2, dtype=jnp.float32)
                       * (-jnp.log(jnp.float32(10000.0)) / embed))          # (E/2,)
    angles = position * div_term                                            # (P, E/2)
    pe = jnp.zeros((pad_size, embed), dtype=jnp.float32)
    pe = pe.at[:, 0::2].set(jnp.sin(angles))
    pe = pe.at[:, 1::2].set(jnp.cos(angles))
    return pe.astype(dtype)                                                 # (P, E)


def positional_encoding_forward(x, pe, dropout_p, *, key=None, training=True):
    """x: (S, B, E); pe: (P, E) with P >= S. Returns dropout(x + pe[:S, None, :])."""
    S, B, E = x.shape
    P, E_pe = pe.shape
    assert E_pe == E and P >= S

    p = float(dropout_p) if training else 0.0
    lanes = B * E
    itemsize = jnp.dtype(x.dtype).itemsize

    # Lane-dense 2D view (free reshape outside the kernel; E/B*E sits on the lane axis,
    # S on sublanes -> dense, unmasked stores for realistic shapes).
    x2 = x.reshape(S, lanes)

    # Tile the sequence axis for software pipelining. Keep the per-tile x block
    # around ~2 MiB so double-buffered in/out tiles fit scoped VMEM on every
    # generation (v5e 16 MiB / v6e 32 MiB / v7x 32-of-64 MiB).
    target_tile_bytes = 2 * 1024 * 1024
    rows = max(8, (target_tile_bytes // max(1, lanes * itemsize)) // 8 * 8)
    tile_s = int(min(_round_up(S, 8), rows))
    grid = (pl.cdiv(S, tile_s),)

    kernel = functools.partial(_pe_dropout_kernel, dropout_p=p, batch=B)

    in_specs = [
        pl.BlockSpec((tile_s, lanes), lambda i: (i, 0)),   # x tile
        pl.BlockSpec((tile_s, E), lambda i: (i, 0)),       # pe rows from the full buffer
    ]
    args = [x2, pe]

    if p > 0.0:
        if key is None:
            key = jax.random.PRNGKey(0)
        # Per-element random bits drawn outside the kernel (deterministic in `key`,
        # unique per tile by construction); the threshold/mask/scale run in-kernel.
        # TODO(synk): on real TPU, replace this extra HBM read with in-kernel
        # pltpu.prng_random_bits seeded with (seed + pl.program_id(0)).
        bits = jax.random.bits(key, (S, lanes), dtype=jnp.uint32)
        in_specs.append(pl.BlockSpec((tile_s, lanes), lambda i: (i, 0)))
        args.append(bits)

    out = pl.pallas_call(
        kernel,
        out_shape=jax.ShapeDtypeStruct((S, lanes), x.dtype),
        grid=grid,
        in_specs=in_specs,
        out_specs=pl.BlockSpec((tile_s, lanes), lambda i: (i, 0)),
        compiler_params=pltpu.CompilerParams(
            dimension_semantics=("parallel",)),   # lets v7x shard S-tiles across its 2 TCs
    )(*args)

    return out.reshape(S, B, E)


if __name__ == "__main__":
    # Small shapes consistent with the module: seq_len=8, batch=2, embed=32, pad_size=16.
    pad_size, embed, seq_len, batch = 16, 32, 8, 2
    dropout_p = 0.1

    root = jax.random.PRNGKey(0)
    kx, kd = jax.random.split(root)
    x = jax.random.normal(kx, (seq_len, batch, embed), dtype=jnp.float32)
    pe = make_positional_encoding(pad_size, embed)

    ref = x + pe[:seq_len][:, None, :]

    # Eval mode: dropout is the identity.
    y_eval = jax.block_until_ready(
        positional_encoding_forward(x, pe, dropout_p, training=False))
    assert y_eval.shape == x.shape
    assert jnp.allclose(y_eval, ref, atol=1e-6), "eval-mode mismatch"

    # Training mode: inverted dropout -- every element is either 0 or ref/(1-p).
    y_train = jax.block_until_ready(
        positional_encoding_forward(x, pe, dropout_p, key=kd, training=True))
    assert y_train.shape == x.shape
    scaled = ref / (1.0 - dropout_p)
    ok = jnp.logical_or(jnp.isclose(y_train, 0.0, atol=1e-6),
                        jnp.isclose(y_train, scaled, atol=1e-5))
    assert bool(jnp.all(ok)), "training-mode dropout mismatch"

    print("KERNEL_OK")
</pallas_src>

<mosaic_0001>
module attributes {stable_mosaic.version = 11 : i64} {
  func.func @_pe_dropout_kernel(%arg0: i32, %arg1: memref<8x64xf32, #tpu.memory_space<vmem>>, %arg2: memref<8x32xf32, #tpu.memory_space<vmem>>, %arg3: memref<8x64xf32, #tpu.memory_space<vmem>>) attributes {dimension_semantics = [#tpu.dimension_semantics<parallel>], iteration_bounds = array<i64: 1>, scalar_prefetch = 0 : i64, scratch_operands = 0 : i64, tpu.core_type = #tpu.core_type<tc>, window_params = [{transform_indices = @transform_0, window_bounds = array<i64: 8, 64>}, {transform_indices = @transform_1, window_bounds = array<i64: 8, 32>}, {transform_indices = @transform_2, window_bounds = array<i64: 8, 64>}]} {
    %c0 = arith.constant 0 : index
    %c0_0 = arith.constant 0 : index
    %0 = vector.load %arg1[%c0, %c0_0] : memref<8x64xf32, #tpu.memory_space<vmem>>, vector<8x64xf32>
    %c0_1 = arith.constant 0 : index
    %c0_2 = arith.constant 0 : index
    %1 = vector.load %arg2[%c0_1, %c0_2] : memref<8x32xf32, #tpu.memory_space<vmem>>, vector<8x32xf32>
    %2 = tpu.concatenate %1, %1 in 1 : vector<8x32xf32>, vector<8x32xf32> -> vector<8x64xf32>
    %3 = arith.addf %0, %2 : vector<8x64xf32>
    %c0_3 = arith.constant 0 : index
    %c0_4 = arith.constant 0 : index
    %4 = vector.load %arg3[%c0_3, %c0_4] : memref<8x64xf32, #tpu.memory_space<vmem>>, vector<8x64xf32>
    tpu.vector_store %arg3[%c0_3, %c0_4], %3 {strides = array<i32>} : memref<8x64xf32, #tpu.memory_space<vmem>>, vector<8x64xf32>,
    return
  }
  func.func @transform_0(%arg0: i32) -> (i32, i32) {
    %c0_i32 = arith.constant 0 : i32
    %c0_i32_0 = arith.constant 0 : i32
    return %arg0, %c0_i32 : i32, i32
  }
  func.func @transform_1(%arg0: i32) -> (i32, i32) {
    %c0_i32 = arith.constant 0 : i32
    %c0_i32_0 = arith.constant 0 : i32
    return %arg0, %c0_i32 : i32, i32
  }
  func.func @transform_2(%arg0: i32) -> (i32, i32) {
    %c0_i32 = arith.constant 0 : i32
    %c0_i32_0 = arith.constant 0 : i32
    return %arg0, %c0_i32 : i32, i32
  }
}

</mosaic_0001>

<bundles_post_ra>
// kernel: tpu_custom_call.1
= control target key start
LH: loop header
LB: loop body
LE: loop exit
PB: predicated region body
PF: predicated region fallthrough
CT: control target
= control target key end

     0   :  { %7 = vsyncpa [#allocation3], 0  ;;  %s179_s0 = inlined_call_operand.hbm [shape: f32[8,64], index: 0, kind: input, shape index: {}]   ;;  %s180_s1 = inlined_call_operand.hbm [shape: f32[16,32], index: 1, kind: input, shape index: {}]   ;;  %s181_s2 = inlined_call_operand.hbm [shape: f32[8,64], index: 2, kind: output, shape index: {}]  }
   0x1   :  { %8 = vsyncpa [#allocation6], 0 }
   0x2   :  { %9 = vsyncpa [#allocation4], 0  ;;  %s15_s11 = sshll.u32 %s179_s0, 4  ;;  %s151_s12 = smov [#allocation2]   ;;  %s16_s11 = int_to_ptr.hbm [resolvable:$true] %s15_s11 }
   0x3   :  { %s17_s13 = sshll.u32 %s151_s12, 4  ;;  %s26_s16 = sshll.u32 %s180_s1, 4  ;;  %s18_s13 = int_to_ptr.vmem [resolvable:$true] %s17_s13  ;;  %s27_s16 = int_to_ptr.hbm [resolvable:$true] %s26_s16 }
   0x4   :  { %20 = dma.hbm_to_vmem [thread:$0]  %s16_s11, 128, %s18_s13, [#allocation3]  }
   0x5   :  { %s152_s17 = smov [#allocation5]  }
   0x6   :  { %s28_s18 = sshll.u32 %s152_s17, 4  ;;  %s29_s18 = int_to_ptr.vmem [resolvable:$true] %s28_s18 }
   0x7   :  { %31 = dma.hbm_to_vmem [thread:$0]  %s27_s16, 128, %s29_s18, [#allocation6]  }
   0x8   :  { %145 = dma.done.wait [#allocation3], 128  }
   0x9   :  { %146 = vsyncadd [#allocation3], 4294967168 }
   0xa   :  { %147 = dma.done.wait [#allocation6], 128  }
   0xb   :  { %148 = vsyncadd [#allocation6], 4294967168  ;;  %v41_v0 = vld [vmem:[#allocation5] sm:$0xff]  ;;  %s153_s0 = smov 32   ;;  %vm46_vm0 = vcmask 261120   ;;  %v40_v1 = vld [vmem:[#allocation2] sm:$0xff] }
   0xc   :  { %43 = vrot.lane.b32.xlu0 %v41_v0, %s153_s0  ;;  %s154_s19 = smov [#allocation7]   ;;  %s58_s1 = sshll.u32 %s181_s2, 4  ;;  %vm49_vm1 = vcmask 523264   ;;  %s59_s1 = int_to_ptr.hbm [resolvable:$true] %s58_s1 }
   0xd   :  { %s56_s20 = sshll.u32 %s154_s19, 4  ;;  %s57_s20 = int_to_ptr.vmem [resolvable:$true] %s56_s20 }
  0x7e   :  { %v44_v2 = vpop.permute.xlu0 %43 }
  0x7f   :  { %v47_v3 = vsel %vm46_vm0, %v41_v0, %v44_v2 }
  0x80   :  { %v48_v4 = vadd.f32 %v47_v3, %v40_v1 }
  0x82   :  { %50 = vst.msk [vmem:[#allocation7] sm:$0xff] %vm49_vm1, %v48_v4 }
  0x83   :  { %61 = dma.vmem_to_hbm [thread:$0]  %s57_s20, 128, %s59_s1, [#allocation4]  }
  0x84   :  { %149 = dma.done.wait [#allocation4], 128  }
  0x85   :  { %150 = vsyncadd [#allocation4], 4294967168 }
  0x86   :  { %66 = vsyncpa [#allocation3], 1 }
  0x87   :  { %67 = vsyncpa [#allocation6], 1 }
  0x88   :  { %68 = vsyncpa [#allocation4], 1 }

</bundles_post_ra>
